<compile_context>
chip_gen: v7x
topology: tpu7x:2x2x1
jax: 0.10.0
libtpu: 0.0.40
codegen_flags: <defaults>
</compile_context>

<pallas_src>
import jax
import jax.numpy as jnp
from jax.experimental import pallas as pl
from jax.experimental.pallas import tpu as pltpu


def _round_up(x, m):
    return (x + m - 1) // m * m


def autoencoder_kernel(x_ref,
                       w1_ref, b1_ref,
                       w2_ref, b2_ref,
                       w3_ref, b3_ref,
                       w4_ref, b4_ref,
                       out_ref):
    cdt = w1_ref.dtype                      # matmul/compute dtype (bf16 or f32)
    x = x_ref[...]                          # [2E, TB]  (batch on lanes)

    # encoder Linear(2E -> H), ReLU  -- single merged matmul (K = 2E)
    h = jnp.dot(w1_ref[...], x, preferred_element_type=jnp.float32) + b1_ref[...]   # [H, TB]
    h = jnp.maximum(h, 0.0)

    # encoder Linear(H -> 2E)
    z = jnp.dot(w2_ref[...], h.astype(cdt),
                preferred_element_type=jnp.float32) + b2_ref[...]                    # [2E, TB]

    # decoder Linear(2E -> H), ReLU
    h = jnp.dot(w3_ref[...], z.astype(cdt),
                preferred_element_type=jnp.float32) + b3_ref[...]                    # [H, TB]
    h = jnp.maximum(h, 0.0)

    # decoder Linear(H -> 1): VPU multiply + sublane reduce -> lane-dense [1, TB]
    logit = jnp.sum(w4_ref[...] * h, axis=0, keepdims=True) + b4_ref[0, 0]           # [1, TB]

    out_ref[...] = jax.nn.sigmoid(logit)


def _choose_block_b(b128, cap=8192):
    # Prefer exactly 2 equal tiles (even tile count -> both v7x TCs busy) for
    # small/medium batches; cap the tile at `cap` lanes for large batches.
    # Working set at cap=8192 is only a few MiB -- far below even v5e's 16 MiB
    # scoped-VMEM default (and we raise the limit to 32 MiB anyway).
    return int(min(cap, max(128, _round_up(pl.cdiv(b128, 2), 128))))


def autoencoder_forward(users, items, params, *, block_b=None,
                        compute_dtype=jnp.bfloat16, use_xla_fallback=True):
    user_emb = params["user_emb"]
    E = user_emb.shape[1]
    H = params["w1"].shape[0]
    e2 = 2 * E
    B = users.shape[0]

    b128 = _round_up(max(B, 1), 128)
    if use_xla_fallback and b128 <= 128:
        # Single-tile regime: pallas_call launch + one grid step is pure fixed
        # overhead; XLA's fused dot chain wins here.
        return reference_forward(users, items, params)

    if block_b is None:
        block_b = _choose_block_b(b128)
    B_pad = _round_up(B, block_b)
    n_tiles = B_pad // block_b

    pad = B_pad - B
    users_p = jnp.pad(users, (0, pad))     # pad tail with a valid index (0); sliced off below
    items_p = jnp.pad(items, (0, pad))

    # One fused XLA pass: gather both tables, concat, transpose, cast.
    # Result is [2E, B_pad] with batch on the lane axis, ready for W1 @ x.
    ue = jnp.take(user_emb, users_p, axis=0)                 # [B_pad, E]
    ie = jnp.take(params["item_emb"], items_p, axis=0)       # [B_pad, E]
    xT = jnp.concatenate([ue, ie], axis=1).T.astype(compute_dtype)   # [2E, B_pad]

    w1 = params["w1"].astype(compute_dtype)           # [H, 2E]
    w2 = params["w2"].astype(compute_dtype)           # [2E, H]
    w3 = params["w3"].astype(compute_dtype)           # [H, 2E]
    b1 = params["b1"].reshape(H, 1).astype(jnp.float32)
    b2 = params["b2"].reshape(e2, 1).astype(jnp.float32)
    b3 = params["b3"].reshape(H, 1).astype(jnp.float32)
    w4 = params["w4"].reshape(H, 1).astype(jnp.float32)   # column for VPU mul + sublane reduce
    b4 = params["b4"].reshape(1, 1).astype(jnp.float32)   # scalar -> SMEM

    act_spec = pl.BlockSpec((e2, block_b), lambda i: (0, i))
    res_spec = lambda shape: pl.BlockSpec(shape, lambda i: (0, 0))  # VMEM-resident weights

    itemsize = jnp.dtype(compute_dtype).itemsize
    flops = int(B_pad * (6 * e2 * H + 2 * H))
    bytes_accessed = int(B_pad * e2 * itemsize + B_pad * 4
                         + 3 * H * e2 * itemsize + (2 * H + e2 + H + 1) * 4)
    cost = pl.CostEstimate(flops=flops, transcendentals=int(B_pad),
                           bytes_accessed=bytes_accessed)

    out = pl.pallas_call(
        autoencoder_kernel,
        out_shape=jax.ShapeDtypeStruct((1, B_pad), jnp.float32),
        grid=(n_tiles,),
        in_specs=[
            act_spec,                                            # xT
            res_spec((H, e2)), res_spec((H, 1)),                 # w1, b1
            res_spec((e2, H)), res_spec((e2, 1)),                # w2, b2
            res_spec((H, e2)), res_spec((H, 1)),                 # w3, b3
            res_spec((H, 1)),                                    # w4 (column, f32)
            pl.BlockSpec(memory_space=pltpu.MemorySpace.SMEM),   # b4 scalar
        ],
        out_specs=pl.BlockSpec((1, block_b), lambda i: (0, i)),
        compiler_params=pltpu.CompilerParams(
            dimension_semantics=("parallel",),        # megacore batch split on v7x
            vmem_limit_bytes=32 * 1024 * 1024),       # raise v5e's 16 MiB scoped default
        cost_estimate=cost,
    )(xT, w1, b1, w2, b2, w3, b3, w4, b4)

    # matches torch .squeeze() for B > 1 (torch returns a 0-d scalar for B == 1)
    return out[0, :B]


def init_params(key, num_users, num_items, embedding_dim, hidden_dim):
    ks = jax.random.split(key, 10)
    e2 = embedding_dim * 2
    s = 0.1
    return {
        "user_emb": s * jax.random.normal(ks[0], (num_users, embedding_dim), jnp.float32),
        "item_emb": s * jax.random.normal(ks[1], (num_items, embedding_dim), jnp.float32),
        # PyTorch nn.Linear layout: W is [out, in], y = x @ W.T + b
        "w1": s * jax.random.normal(ks[2], (hidden_dim, e2), jnp.float32),
        "b1": s * jax.random.normal(ks[3], (hidden_dim,), jnp.float32),
        "w2": s * jax.random.normal(ks[4], (e2, hidden_dim), jnp.float32),
        "b2": s * jax.random.normal(ks[5], (e2,), jnp.float32),
        "w3": s * jax.random.normal(ks[6], (hidden_dim, e2), jnp.float32),
        "b3": s * jax.random.normal(ks[7], (hidden_dim,), jnp.float32),
        "w4": s * jax.random.normal(ks[8], (1, hidden_dim), jnp.float32),
        "b4": s * jax.random.normal(ks[9], (1,), jnp.float32),
    }


def reference_forward(users, items, params):
    ue = jnp.take(params["user_emb"], users, axis=0)
    ie = jnp.take(params["item_emb"], items, axis=0)
    x = jnp.concatenate([ue, ie], axis=1)
    h = jnp.maximum(x @ params["w1"].T + params["b1"], 0.0)
    x = h @ params["w2"].T + params["b2"]
    h = jnp.maximum(x @ params["w3"].T + params["b3"], 0.0)
    logit = h @ params["w4"].T + params["b4"]
    return jax.nn.sigmoid(logit).squeeze(-1)


if __name__ == "__main__":
    # Small synthetic sizes consistent with the module's forward.
    num_users, num_items = 64, 96
    embedding_dim, hidden_dim = 16, 32

    key = jax.random.PRNGKey(0)
    kp, ku, ki = jax.random.split(key, 3)
    params = init_params(kp, num_users, num_items, embedding_dim, hidden_dim)

    # --- kernel path: batch large enough for >=2 tiles (exercises padding,
    # megacore-friendly tiling, and the bf16 matmul path) ---
    batch = 384
    users = jax.random.randint(ku, (batch,), 0, num_users, dtype=jnp.int32)
    items = jax.random.randint(ki, (batch,), 0, num_items, dtype=jnp.int32)
    ref = reference_forward(users, items, params)

    out_bf16 = jax.block_until_ready(autoencoder_forward(users, items, params))
    assert out_bf16.shape == (batch,), out_bf16.shape
    assert jnp.allclose(out_bf16, ref, atol=2e-2), float(jnp.max(jnp.abs(out_bf16 - ref)))

    out_f32 = jax.block_until_ready(
        autoencoder_forward(users, items, params, compute_dtype=jnp.float32))
    assert out_f32.shape == (batch,), out_f32.shape
    assert jnp.allclose(out_f32, ref, atol=1e-5, rtol=1e-5), (out_f32, ref)

    # --- tiny batch: plain-XLA fallback path (one tile would be pure launch overhead) ---
    bs = 8
    out_small = jax.block_until_ready(autoencoder_forward(users[:bs], items[:bs], params))
    ref_small = reference_forward(users[:bs], items[:bs], params)
    assert out_small.shape == (bs,), out_small.shape
    assert jnp.allclose(out_small, ref_small, atol=1e-5, rtol=1e-5), (out_small, ref_small)

    print("KERNEL_OK")
</pallas_src>

<mosaic_0001>
module attributes {stable_mosaic.version = 11 : i64} {
  func.func @autoencoder_kernel(%arg0: i32, %arg1: memref<32x256xbf16, #tpu.memory_space<vmem>>, %arg2: memref<32x32xbf16, #tpu.memory_space<vmem>>, %arg3: memref<32x1xf32, #tpu.memory_space<vmem>>, %arg4: memref<32x32xbf16, #tpu.memory_space<vmem>>, %arg5: memref<32x1xf32, #tpu.memory_space<vmem>>, %arg6: memref<32x32xbf16, #tpu.memory_space<vmem>>, %arg7: memref<32x1xf32, #tpu.memory_space<vmem>>, %arg8: memref<32x1xf32, #tpu.memory_space<vmem>>, %arg9: memref<1x1xf32, #tpu.memory_space<smem>>, %arg10: memref<1x256xf32, #tpu.memory_space<vmem>>) attributes {dimension_semantics = [#tpu.dimension_semantics<parallel>], iteration_bounds = array<i64: 2>, scalar_prefetch = 0 : i64, scratch_operands = 0 : i64, tpu.core_type = #tpu.core_type<tc>, window_params = [{transform_indices = @transform_0, window_bounds = array<i64: 32, 256>}, {pipeline_mode = #tpu.pipeline_mode<synchronous>, transform_indices = @transform_1, window_bounds = array<i64: 32, 32>}, {pipeline_mode = #tpu.pipeline_mode<synchronous>, transform_indices = @transform_2, window_bounds = array<i64: 32, 1>}, {pipeline_mode = #tpu.pipeline_mode<synchronous>, transform_indices = @transform_3, window_bounds = array<i64: 32, 32>}, {pipeline_mode = #tpu.pipeline_mode<synchronous>, transform_indices = @transform_4, window_bounds = array<i64: 32, 1>}, {pipeline_mode = #tpu.pipeline_mode<synchronous>, transform_indices = @transform_5, window_bounds = array<i64: 32, 32>}, {pipeline_mode = #tpu.pipeline_mode<synchronous>, transform_indices = @transform_6, window_bounds = array<i64: 32, 1>}, {pipeline_mode = #tpu.pipeline_mode<synchronous>, transform_indices = @transform_7, window_bounds = array<i64: 32, 1>}, {transform_indices = @transform_8, window_bounds = array<i64: 1, 1>}, {transform_indices = @transform_9, window_bounds = array<i64: 1, 256>}]} {
    %c0 = arith.constant 0 : index
    %c0_0 = arith.constant 0 : index
    %0 = vector.load %arg1[%c0, %c0_0] : memref<32x256xbf16, #tpu.memory_space<vmem>>, vector<32x256xbf16>
    %c0_1 = arith.constant 0 : index
    %c0_2 = arith.constant 0 : index
    %1 = vector.load %arg2[%c0_1, %c0_2] : memref<32x32xbf16, #tpu.memory_space<vmem>>, vector<32x32xbf16>
    %cst = arith.constant dense<0.000000e+00> : vector<32x256xf32>
    %2 = tpu.matmul %1, %0, %cst {dimension_numbers = #tpu.dot_dimension_numbers<[1], [0], [0], [1], [0, 0, 1, 1], [], []>} : vector<32x32xbf16>, vector<32x256xbf16>, vector<32x256xf32> -> vector<32x256xf32>
    %c0_3 = arith.constant 0 : index
    %c0_4 = arith.constant 0 : index
    %3 = vector.load %arg3[%c0_3, %c0_4] : memref<32x1xf32, #tpu.memory_space<vmem>>, vector<32x1xf32>
    %4 = vector.broadcast %3 : vector<32x1xf32> to vector<32x256xf32>
    %5 = arith.addf %2, %4 : vector<32x256xf32>
    %cst_5 = arith.constant 0.000000e+00 : f32
    %6 = vector.broadcast %cst_5 : f32 to vector<32x256xf32>
    %7 = arith.maximumf %5, %6 : vector<32x256xf32>
    %c0_6 = arith.constant 0 : index
    %c0_7 = arith.constant 0 : index
    %8 = vector.load %arg4[%c0_6, %c0_7] : memref<32x32xbf16, #tpu.memory_space<vmem>>, vector<32x32xbf16>
    %9 = arith.truncf %7 : vector<32x256xf32> to vector<32x256xbf16>
    %cst_8 = arith.constant dense<0.000000e+00> : vector<32x256xf32>
    %10 = tpu.matmul %8, %9, %cst_8 {dimension_numbers = #tpu.dot_dimension_numbers<[1], [0], [0], [1], [0, 0, 1, 1], [], []>} : vector<32x32xbf16>, vector<32x256xbf16>, vector<32x256xf32> -> vector<32x256xf32>
    %c0_9 = arith.constant 0 : index
    %c0_10 = arith.constant 0 : index
    %11 = vector.load %arg5[%c0_9, %c0_10] : memref<32x1xf32, #tpu.memory_space<vmem>>, vector<32x1xf32>
    %12 = vector.broadcast %11 : vector<32x1xf32> to vector<32x256xf32>
    %13 = arith.addf %10, %12 : vector<32x256xf32>
    %c0_11 = arith.constant 0 : index
    %c0_12 = arith.constant 0 : index
    %14 = vector.load %arg6[%c0_11, %c0_12] : memref<32x32xbf16, #tpu.memory_space<vmem>>, vector<32x32xbf16>
    %15 = arith.truncf %13 : vector<32x256xf32> to vector<32x256xbf16>
    %cst_13 = arith.constant dense<0.000000e+00> : vector<32x256xf32>
    %16 = tpu.matmul %14, %15, %cst_13 {dimension_numbers = #tpu.dot_dimension_numbers<[1], [0], [0], [1], [0, 0, 1, 1], [], []>} : vector<32x32xbf16>, vector<32x256xbf16>, vector<32x256xf32> -> vector<32x256xf32>
    %c0_14 = arith.constant 0 : index
    %c0_15 = arith.constant 0 : index
    %17 = vector.load %arg7[%c0_14, %c0_15] : memref<32x1xf32, #tpu.memory_space<vmem>>, vector<32x1xf32>
    %18 = vector.broadcast %17 : vector<32x1xf32> to vector<32x256xf32>
    %19 = arith.addf %16, %18 : vector<32x256xf32>
    %cst_16 = arith.constant 0.000000e+00 : f32
    %20 = vector.broadcast %cst_16 : f32 to vector<32x256xf32>
    %21 = arith.maximumf %19, %20 : vector<32x256xf32>
    %c0_17 = arith.constant 0 : index
    %c0_18 = arith.constant 0 : index
    %22 = vector.load %arg8[%c0_17, %c0_18] : memref<32x1xf32, #tpu.memory_space<vmem>>, vector<32x1xf32>
    %23 = vector.broadcast %22 : vector<32x1xf32> to vector<32x256xf32>
    %24 = arith.mulf %23, %21 : vector<32x256xf32>
    %cst_19 = arith.constant dense<0.000000e+00> : vector<256xf32>
    %25 = vector.multi_reduction <add>, %24, %cst_19 [0] : vector<32x256xf32> to vector<256xf32>
    %26 = vector.shape_cast %25 : vector<256xf32> to vector<1x256xf32>
    %c0_20 = arith.constant 0 : index
    %c0_21 = arith.constant 0 : index
    %27 = memref.load %arg9[%c0_20, %c0_21] : memref<1x1xf32, #tpu.memory_space<smem>>
    %28 = vector.broadcast %27 : f32 to vector<1x256xf32>
    %29 = arith.addf %26, %28 : vector<1x256xf32>
    %30 = arith.negf %29 : vector<1x256xf32>
    %31 = math.exp %30 : vector<1x256xf32>
    %cst_22 = arith.constant 1.000000e+00 : f32
    %32 = vector.broadcast %cst_22 : f32 to vector<1x256xf32>
    %33 = arith.addf %32, %31 : vector<1x256xf32>
    %34 = arith.divf %32, %33 : vector<1x256xf32>
    %c0_23 = arith.constant 0 : index
    %c0_24 = arith.constant 0 : index
    %35 = vector.load %arg10[%c0_23, %c0_24] : memref<1x256xf32, #tpu.memory_space<vmem>>, vector<1x256xf32>
    tpu.vector_store %arg10[%c0_23, %c0_24], %34 {strides = array<i32>} : memref<1x256xf32, #tpu.memory_space<vmem>>, vector<1x256xf32>,
    return
  }
  func.func @transform_0(%arg0: i32) -> (i32, i32) {
    %c0_i32 = arith.constant 0 : i32
    %c0_i32_0 = arith.constant 0 : i32
    return %c0_i32, %arg0 : i32, i32
  }
  func.func @transform_1(%arg0: i32) -> (i32, i32) {
    %c0_i32 = arith.constant 0 : i32
    %c0_i32_0 = arith.constant 0 : i32
    %c0_i32_1 = arith.constant 0 : i32
    return %c0_i32, %c0_i32_0 : i32, i32
  }
  func.func @transform_2(%arg0: i32) -> (i32, i32) {
    %c0_i32 = arith.constant 0 : i32
    %c0_i32_0 = arith.constant 0 : i32
    %c0_i32_1 = arith.constant 0 : i32
    return %c0_i32, %c0_i32_0 : i32, i32
  }
  func.func @transform_3(%arg0: i32) -> (i32, i32) {
    %c0_i32 = arith.constant 0 : i32
    %c0_i32_0 = arith.constant 0 : i32
    %c0_i32_1 = arith.constant 0 : i32
    return %c0_i32, %c0_i32_0 : i32, i32
  }
  func.func @transform_4(%arg0: i32) -> (i32, i32) {
    %c0_i32 = arith.constant 0 : i32
    %c0_i32_0 = arith.constant 0 : i32
    %c0_i32_1 = arith.constant 0 : i32
    return %c0_i32, %c0_i32_0 : i32, i32
  }
  func.func @transform_5(%arg0: i32) -> (i32, i32) {
    %c0_i32 = arith.constant 0 : i32
    %c0_i32_0 = arith.constant 0 : i32
    %c0_i32_1 = arith.constant 0 : i32
    return %c0_i32, %c0_i32_0 : i32, i32
  }
  func.func @transform_6(%arg0: i32) -> (i32, i32) {
    %c0_i32 = arith.constant 0 : i32
    %c0_i32_0 = arith.constant 0 : i32
    %c0_i32_1 = arith.constant 0 : i32
    return %c0_i32, %c0_i32_0 : i32, i32
  }
  func.func @transform_7(%arg0: i32) -> (i32, i32) {
    %c0_i32 = arith.constant 0 : i32
    %c0_i32_0 = arith.constant 0 : i32
    %c0_i32_1 = arith.constant 0 : i32
    return %c0_i32, %c0_i32_0 : i32, i32
  }
  func.func @transform_8(%arg0: i32) -> (i32, i32) {
    %c0_i32 = arith.constant 0 : i32
    %c0_i32_0 = arith.constant 0 : i32
    %c0_i32_1 = arith.constant 0 : i32
    return %c0_i32, %c0_i32_0 : i32, i32
  }
  func.func @transform_9(%arg0: i32) -> (i32, i32) {
    %c0_i32 = arith.constant 0 : i32
    %c0_i32_0 = arith.constant 0 : i32
    return %c0_i32, %arg0 : i32, i32
  }
}

</mosaic_0001>

<bundles_post_ra>
// kernel: tpu_custom_call.1
= control target key start
LH: loop header
LB: loop body
LE: loop exit
PB: predicated region body
PF: predicated region fallthrough
CT: control target
= control target key end

     0   :  { %s1302_s0 = inlined_call_operand.vmem [shape: bf16[32,512], index: 0, kind: input, shape index: {}]   ;;  %s1303_s1 = inlined_call_operand.vmem [shape: bf16[32,32], index: 1, kind: input, shape index: {}]   ;;  %s1304_s2 = inlined_call_operand.vmem [shape: f32[32,1], index: 2, kind: input, shape index: {}]   ;;  %s1305_s3 = inlined_call_operand.vmem [shape: bf16[32,32], index: 3, kind: input, shape index: {}]   ;;  %s1306_s4 = inlined_call_operand.vmem [shape: f32[32,1], index: 4, kind: input, shape index: {}]   ;;  %s1307_s5 = inlined_call_operand.vmem [shape: bf16[32,32], index: 5, kind: input, shape index: {}]   ;;  %s1308_s6 = inlined_call_operand.vmem [shape: f32[32,1], index: 6, kind: input, shape index: {}]   ;;  %s1309_s7 = inlined_call_operand.vmem [shape: f32[32,1], index: 7, kind: input, shape index: {}]   ;;  %s1310_s8 = inlined_call_operand.<no memory space> [shape: f32[1,1], index: 8, kind: input, shape index: {}]   ;;  %s1311_s9 = inlined_call_operand.hbm [shape: f32[1,512], index: 9, kind: output, shape index: {}]  }
   0x1   :  { %14 = sst [smem:[#allocation2]] %s1310_s8 }
   0x2   :  { %15 = vsyncpa [#allocation5], 0 }
   0x3   :  { %17 = vsyncpa [#allocation5 + $0x1], 0  ;;  %s1112_s11 = smov 0   ;;  %s1114_s12 = smov 0  }
   0x4   :  { %s1116_s13 = smov 0   ;;  %s1118_s14 = smov 0  }
   0x5 LB: > { %s890_s8 = sadd.s32 4294967295, %s1054_s14   ;;  %s891_s15 = sadd.s32 4294967294, %s1054_s14   ;;  %s1054_s14 = sphi %s1118_s14, %s1317_s14   ;;  %s1050_s13 = sphi %s1116_s13, %s1316_s13   ;;  %s1046_s12 = sphi %s1114_s12, %s1315_s12   ;;  %s1042_s11 = sphi %s1112_s11, %s1314_s11  }
   0x6   : > { %s1135_s16 = sadd.s32 1, %s1054_s14   ;;  %s30_s17 = sadd.s32 1, %s1050_s13 }
   0x7   : > { %s27_s18 = ssub.s32 %s1054_s14, %s1135_s16  ;;  %p37_p0 = scmp.ne.s32.totalorder %s1050_s13, %s1046_s12 }
   0x8   : > { %p28_p1 = scmp.eq.s32.totalorder %s27_s18, 0  ;;  %p38_p2 = scmp.eq.s32.totalorder %s1054_s14, 0 }
   0x9   : > { %p235_p3 = scmp.eq.s32.totalorder %s890_s8, 1  ;;  %p240_p4 = scmp.ne.s32.totalorder %s1046_s12, %s1042_s11 }
   0xa   : > { %s1148_s19 = scalar_select %p28_p1, %s1050_s13, %s30_s17  }
   0xb   : > { %p39_p5 = por %p38_p2, %p37_p0  ;;  %p1150_p6 = por %p235_p3, %p37_p0 }
   0xc   : > { %p241_p7 = scmp.eq.s32.totalorder %s891_s15, 1  ;;  %p893_p9 = scmp.ge.s32.totalorder %s1054_s14, 2 }
   0xe   : > { %p1154_p8 = por %p241_p7, %p240_p4  ;;  %281 = sbr.rel (%p893_p9) target bundleno = 28 (0x1c), region = 48 }
  0x15   : > { %284 = sbr.rel (!%p39_p5) target bundleno = 28 (0x1c), region = 52  ;;  %s286_s22 = sand.u32 (%p39_p5), 1, %s1050_s13  }
  0x16   : > { %s923_s23 = sshll.u32 (%p39_p5), %s1054_s14, 3  ;;  %s894_s24 = sshll.u32 (%p39_p5), %s286_s22, 5 }
  0x17   : > { %s291_s27 = scalar_lea.vmem (%p39_p5), %s1302_s0, %s923_s23  ;;  %s288_s28 = scalar_lea.vmem (%p39_p5), [#allocation3], %s894_s24 }
  0x18   : > { %v325_v0 = vld [vmem:[%s291_s27] sm:$0xff] (%p39_p5)  ;;  %v327_v1 = vld [vmem:[%s291_s27 + $0x10] sm:$0xff] (%p39_p5) }
  0x19   : > { %v329_v2 = vld [vmem:[%s291_s27 + $0x20] sm:$0xff] (%p39_p5)  ;;  %326 = vst [vmem:[%s288_s28] sm:$0xff] (%p39_p5), %v325_v0  ;;  %328 = vst [vmem:[%s288_s28 + $0x8] sm:$0xff] (%p39_p5), %v327_v1  ;;  %v331_v3 = vld [vmem:[%s291_s27 + $0x30] sm:$0xff] (%p39_p5) }
  0x1a   : > { %330 = vst [vmem:[%s288_s28 + $0x10] sm:$0xff] (%p39_p5), %v329_v2  ;;  %332 = vst [vmem:[%s288_s28 + $0x18] sm:$0xff] (%p39_p5), %v331_v3 }
  0x1c PF: > { %p897_p10 = scmp.ge.s32.totalorder %s1054_s14, 1  ;;  %p337_p11 = scmp.lt.s32.totalorder %s1054_s14, 3 }
  0x1e   : > { %p338_p12 = pnand %p897_p10, %p337_p11 }
  0x1f   : > { %s1169_s29 = sand.u32 (!%p338_p12), 1, %s1046_s12   ;;  %v1056_v4 = vmov (!%p338_p12), 0   ;;  %v390_v5 = vld [vmem:[%s1304_s2] sm:$0xff] (!%p338_p12)  ;;  %v392_v6 = vld [vmem:[%s1304_s2 + $0x10] sm:$0xff] (!%p338_p12)  ;;  %v391_v10 = vld [vmem:[%s1304_s2 + $0x8] sm:$0xff] (!%p338_p12)  ;;  %vm444_vm0 = vcmask (!%p338_p12), 261120  }
  0x20   : > { %341 = sbr.rel (%p338_p12) target bundleno = 794 (0x31a), region = 90  ;;  %s898_s30 = sshll.u32 (!%p338_p12), %s1169_s29, 5  ;;  %483 = vmatprep.mubr.bf16.mxu0 (!%p338_p12), %v1056_v4  ;;  %493 = vmatprep.mubr.bf16.mxu1 (!%p338_p12), %v1056_v4  ;;  %v393_v12 = vld [vmem:[%s1304_s2 + $0x18] sm:$0xff] (!%p338_p12)  ;;  %v978_v13 = vld [vmem:[%s1303_s1] sm:$0xff] (!%p338_p12)   ;;  %v979_v14 = vld [vmem:[%s1303_s1 + $0x8] sm:$0xff] (!%p338_p12)  }
  0x21   : > { %970 = vset.pattern.permute.xlu0 (!%p338_p12), %v1056_v4  ;;  %971 = vset.pattern.permute.xlu1 (!%p338_p12), %v1056_v4  ;;  %s346_s22 = scalar_lea.vmem (!%p338_p12), [#allocation3], %s898_s30  ;;  %v520_v15 = vld [vmem:[%s1306_s4] sm:$0xff] (!%p338_p12)  ;;  %v521_v16 = vld [vmem:[%s1306_s4 + $0x8] sm:$0xff] (!%p338_p12)  ;;  %v522_v17 = vld [vmem:[%s1306_s4 + $0x10] sm:$0xff] (!%p338_p12)  ;;  %s772_s27 = sld [smem:[#allocation2]] (!%p338_p12) }
  0x22   : > { %v972_v7 = vld [vmem:[%s346_s22 + $0x4] ss:$8 sps:$4 sm:$0xff] (!%p338_p12)   ;;  %396 = vperm.xlu0 (!%p338_p12), %970, %v390_v5   ;;  %406 = vperm.xlu1 (!%p338_p12), %971, %v392_v6   ;;  %v974_v8 = vld [vmem:[%s346_s22] ss:$8 sps:$4 sm:$0xff] (!%p338_p12)   ;;  %v975_v9 = vld [vmem:[%s346_s22 + $0x14] ss:$8 sps:$4 sm:$0xff] (!%p338_p12)  }
  0x23   : > { %451 = vmatprep.subr.bf16.mxu0 (!%p338_p12), %v972_v7  ;;  %925 = vmatprep.subr.bf16.mxu1 (!%p338_p12), %v972_v7  ;;  %v977_v11 = vld [vmem:[%s346_s22 + $0x10] ss:$8 sps:$4 sm:$0xff] (!%p338_p12)   ;;  %v621_v19 = vld [vmem:[%s1308_s6] sm:$0xff] (!%p338_p12)  ;;  %v622_v20 = vld [vmem:[%s1308_s6 + $0x8] sm:$0xff] (!%p338_p12)  ;;  %s899_s28 = sshll.u32 (!%p338_p12), %s1169_s29, 1  ;;  %s924_s30 = sshll.u32 (!%p338_p12), %s890_s8, 5 }
  0x24   : > { %452 = vmatpush1.bf16.msra.mxu0 (!%p338_p12), %v974_v8  ;;  %927 = vmatpush1.bf16.msra.mxu1 (!%p338_p12), %v974_v8  ;;  %v523_v18 = vld [vmem:[%s1306_s4 + $0x18] sm:$0xff] (!%p338_p12)  ;;  %v623_v21 = vld [vmem:[%s1308_s6 + $0x10] sm:$0xff] (!%p338_p12)  ;;  %v722_v23 = vld [vmem:[%s1309_s7] sm:$0xff] (!%p338_p12)  ;;  %s378_s10 = scalar_lea.vmem (!%p338_p12), [#allocation4], %s899_s28  ;;  %s1258_s22 = scalar_lea.hbm (!%p338_p12), %s1311_s9, %s924_s30 }
  0x25   : > { %453 = vmatprep.subr.bf16.mxu0 (!%p338_p12), %v975_v9  ;;  %926 = vmatprep.subr.bf16.mxu1 (!%p338_p12), %v975_v9  ;;  %v624_v22 = vld [vmem:[%s1308_s6 + $0x18] sm:$0xff] (!%p338_p12)  ;;  %v723_v24 = vld [vmem:[%s1309_s7 + $0x8] sm:$0xff] (!%p338_p12)  ;;  %v724_v25 = vld [vmem:[%s1309_s7 + $0x10] sm:$0xff] (!%p338_p12)  ;;  %s826_s15 = sshll.u32 (!%p338_p12), %s378_s10, 4  ;;  %s812_s23 = scalar_lea.sflag (!%p338_p12), [#allocation5], %s1169_s29  ;;  %s1260_s15 = int_to_ptr.vmem [resolvable:$true] %s826_s15 }
  0x26   : > { %401 = vperm.xlu0 (!%p338_p12), %970, %v391_v10   ;;  %411 = vperm.xlu1 (!%p338_p12), %971, %v393_v12   ;;  %v725_v26 = vld [vmem:[%s1309_s7 + $0x18] sm:$0xff] (!%p338_p12)  ;;  %v980_v59 = vld [vmem:[%s1305_s3] sm:$0xff] (!%p338_p12)   ;;  %v981_v60 = vld [vmem:[%s1305_s3 + $0x8] sm:$0xff] (!%p338_p12)   ;;  %s992_s24 = scalar_lea.vmem (!%p338_p12), %s1260_s15, 32  ;;  %s1058_s8 = smov (!%p338_p12), [#allocation4]  }
  0x27   : > { %p993_p13 = scmp.ne.s32.totalorder %s1260_s15, %s992_s24  ;;  %s996_s25 = sshll.u32 %s1058_s8, 4  ;;  %s997_s25 = int_to_ptr.vmem [resolvable:$false] %s996_s25 }
  0x28   : > { %454 = vmatpush1.bf16.msra.mxu0 %v977_v11  ;;  %928 = vmatpush1.bf16.msra.mxu1 %v977_v11  ;;  %s998_s26 = scalar_lea.vmem %s997_s25, 64  ;;  %p999_p2 = scmp.lt.s32.totalorder %s1260_s15, %s997_s25 }
  0x29   : > { %p994_p0 = pnand %p993_p13, %p1150_p6  ;;  %p1000_p3 = scmp.lt.s32.totalorder %s998_s26, %s992_s24 }
  0x2a   : > { %526 = vperm.xlu0 %970, %v520_v15   ;;  %531 = vperm.xlu1 %971, %v521_v16  }
  0x2b   : > { %906 = vmatmul.mubr.msk.bf16.vlgmr.msra.gmra.mrb[0].mxu0 %vm444_vm0, %v978_v13  ;;  %907 = vmatmul.mubr.msk.bf16.vlgmr.msra.gmra.mrb[0].mxu1 %vm444_vm0, %v979_v14  ;;  %p995_p1 = pneg %p994_p0  ;;  %p1001_p4 = por %p1000_p3, %p999_p2 }
  0x2c   : > { %592 = vmatprep.mubr.bf16.mxu1 %v1056_v4  ;;  %693 = vmatprep.mubr.bf16.mxu0 %v1056_v4 }
  0x2d   : > { %p1002_p5 = pnand %p1001_p4, %p995_p1 }
  0x2e   : > { %536 = vperm.xlu0 %970, %v522_v17   ;;  %541 = vperm.xlu1 %971, %v523_v18  }
  0x32   : > { %627 = vperm.xlu0 %970, %v621_v19   ;;  %632 = vperm.xlu1 %971, %v622_v20  }
  0x36   : > { %637 = vperm.xlu0 %970, %v623_v21   ;;  %642 = vperm.xlu1 %971, %v624_v22   ;;  %v982_v22 = vld [vmem:[%s1307_s5] sm:$0xff]  }
  0x3a   : > { %728 = vperm.xlu0 %970, %v722_v23   ;;  %733 = vperm.xlu1 %971, %v723_v24   ;;  %v983_v23 = vld [vmem:[%s1307_s5 + $0x8] sm:$0xff]  }
  0x3e   : > { %738 = vperm.xlu0 %970, %v724_v25   ;;  %743 = vperm.xlu1 %971, %v725_v26  }
  0xa1   : > { %v397_v27 = vpop.permute.xlu0 %396  ;;  %v407_v28 = vpop.permute.xlu1 %406 }
  0xa5   : > { %v402_v29 = vpop.permute.xlu0 %401  ;;  %v412_v30 = vpop.permute.xlu1 %411 }
  0xa9   : > { %v527_v62 = vpop.permute.xlu0 %526  ;;  %v532_v0 = vpop.permute.xlu1 %531 }
  0xad   : > { %v537_v11 = vpop.permute.xlu0 %536  ;;  %v542_v13 = vpop.permute.xlu1 %541 }
  0xb1   : > { %v628_v24 = vpop.permute.xlu0 %627  ;;  %v633_v25 = vpop.permute.xlu1 %632 }
  0xb5   : > { %v638_v26 = vpop.permute.xlu0 %637 }
  0xfe   : > { %v485_v31 = vpop.f32.mrb[0].mxu0  ;;  %v495_v32 = vpop.f32.mrb[0].mxu1 }
  0xff   : > { %v486_v33 = vadd.f32 %v485_v31, %v397_v27  ;;  %v496_v34 = vadd.f32 %v495_v32, %v407_v28  ;;  %v487_v35 = vpop.f32.mrb[1].mxu0  ;;  %v497_v36 = vpop.f32.mrb[1].mxu1 }
 0x100   : > { %v488_v37 = vadd.f32 %v487_v35, %v397_v27  ;;  %v498_v38 = vadd.f32 %v497_v36, %v407_v28  ;;  %v489_v39 = vpop.f32.mrb[2].mxu0  ;;  %v499_v40 = vpop.f32.mrb[2].mxu1 }
 0x101   : > { %v508_v41 = vmax.f32 %v496_v34, 0.0  ;;  %v490_v42 = vadd.f32 %v489_v39, %v402_v29  ;;  %v500_v43 = vadd.f32 %v499_v40, %v412_v30  ;;  %v491_v44 = vpop.f32.mrb[3].mxu0  ;;  %v501_v45 = vpop.f32.mrb[3].mxu1  ;;  %v504_v49 = vmax.f32 %v486_v33, 0.0 }
 0x102   : > { %v509_v46 = vmax.f32 %v498_v38, 0.0  ;;  %v492_v47 = vadd.f32 %v491_v44, %v402_v29  ;;  %v502_v48 = vadd.f32 %v501_v45, %v412_v30  ;;  %v505_v52 = vmax.f32 %v488_v37, 0.0  ;;  %v643_v27 = vpop.permute.xlu1 %642  ;;  %v729_v38 = vpop.permute.xlu0 %728 }
 0x103   : > { %v506_v50 = vmax.f32 %v490_v42, 0.0  ;;  %v510_v51 = vmax.f32 %v500_v43, 0.0 }
 0x104   : > { %v507_v53 = vmax.f32 %v492_v47, 0.0  ;;  %v511_v54 = vmax.f32 %v502_v48, 0.0 }
 0x105   : > { %v516_v55 = vpack.c.bf16 %v506_v50, %v504_v49  ;;  %v518_v56 = vpack.c.bf16 %v510_v51, %v508_v41 }
 0x106   : > { %v517_v57 = vpack.c.bf16 %v507_v53, %v505_v52  ;;  %v519_v58 = vpack.c.bf16 %v511_v54, %v509_v46  ;;  %v734_v39 = vpop.permute.xlu1 %733 }
 0x108   : > { %560 = vmatprep.subr.bf16.mxu1 %v517_v57 }
 0x109   : > { %561 = vmatpush1.bf16.msra.mxu1 %v516_v55  ;;  %v739_v55 = vpop.permute.xlu0 %738 }
 0x10a   : > { %562 = vmatprep.subr.bf16.mxu1 %v519_v58 }
 0x10d   : > { %563 = vmatpush1.bf16.msra.mxu1 %v518_v56 }
 0x110   : > { %910 = vmatmul.mubr.msk.bf16.vlgmr.msra.gmra.mrb[4].mxu1 %vm444_vm0, %v980_v59 }
 0x111   : > { %602 = vmatprep.mubr.bf16.mxu1 %v1056_v4 }
 0x118   : > { %911 = vmatmul.mubr.msk.bf16.gmra.mrb[8].mxu1 %vm444_vm0, %v981_v60  ;;  %v744_v60 = vpop.permute.xlu1 %743 }
 0x1e3   : > { %v594_v61 = vpop.f32.mrb[4].mxu1 }
 0x1e4   : > { %v596_v63 = vpop.f32.mrb[5].mxu1  ;;  %v595_v2 = vadd.f32 %v594_v61, %v527_v62 }
 0x1e5   : > { %v598_v1 = vpop.f32.mrb[6].mxu1  ;;  %v597_v6 = vadd.f32 %v596_v63, %v527_v62 }
 0x1e6   : > { %v599_v3 = vadd.f32 %v598_v1, %v532_v0  ;;  %v600_v5 = vpop.f32.mrb[7].mxu1 }
 0x1e7   : > { %v601_v7 = vadd.f32 %v600_v5, %v532_v0 }
 0x1e8   : > { %v617_v8 = vpack.c.bf16 %v599_v3, %v595_v2 }
 0x1e9   : > { %v618_v9 = vpack.c.bf16 %v601_v7, %v597_v6 }
 0x1eb   : > { %v604_v10 = vpop.f32.mrb[8].mxu1  ;;  %661 = vmatprep.subr.bf16.mxu0 %v618_v9 }
 0x1ec   : > { %v606_v12 = vpop.f32.mrb[9].mxu1  ;;  %662 = vmatpush1.bf16.msra.mxu0 %v617_v8  ;;  %v605_v15 = vadd.f32 %v604_v10, %v537_v11 }
 0x1ed   : > { %v608_v14 = vpop.f32.mrb[10].mxu1  ;;  %v607_v18 = vadd.f32 %v606_v12, %v537_v11 }
 0x1ee   : > { %v609_v16 = vadd.f32 %v608_v14, %v542_v13  ;;  %v610_v17 = vpop.f32.mrb[11].mxu1 }
 0x1ef   : > { %v611_v19 = vadd.f32 %v610_v17, %v542_v13 }
 0x1f0   : > { %v619_v20 = vpack.c.bf16 %v609_v16, %v605_v15  ;;  %v773_v15 = vstv %s772_s27 }
 0x1f1   : > { %v620_v21 = vpack.c.bf16 %v611_v19, %v607_v18 }
 0x1f3   : > { %663 = vmatprep.subr.bf16.mxu0 %v620_v21 }
 0x1f4   : > { %664 = vmatpush1.bf16.msra.mxu0 %v619_v20 }
 0x1f7   : > { %914 = vmatmul.mubr.msk.bf16.vlgmr.msra.gmra.mrb[4].mxu0 %vm444_vm0, %v982_v22 }
 0x1f8   : > { %703 = vmatprep.mubr.bf16.mxu0 %v1056_v4 }
 0x1ff   : > { %915 = vmatmul.mubr.msk.bf16.gmra.mrb[8].mxu0 %vm444_vm0, %v983_v23 }
 0x2ca   : > { %v695_v28 = vpop.f32.mrb[4].mxu0 }
 0x2cb   : > { %v696_v29 = vadd.f32 %v695_v28, %v628_v24  ;;  %v697_v30 = vpop.f32.mrb[5].mxu0 }
 0x2cc   : > { %v698_v31 = vadd.f32 %v697_v30, %v628_v24  ;;  %v699_v32 = vpop.f32.mrb[6].mxu0 }
 0x2cd   : > { %v714_v33 = vmax.f32 %v696_v29, 0.0  ;;  %v700_v34 = vadd.f32 %v699_v32, %v633_v25  ;;  %v701_v35 = vpop.f32.mrb[7].mxu0  ;;  %v794_v29 = vlaneseq }
 0x2ce   : > { %v715_v36 = vmax.f32 %v698_v31, 0.0  ;;  %v702_v4 = vadd.f32 %v701_v35, %v633_v25 }
 0x2cf   : > { %v716_v37 = vmax.f32 %v700_v34, 0.0  ;;  %v746_v41 = vmul.f32 %v729_v38, %v714_v33  ;;  %v795_v31 = vshrl.u32 %v794_v29, 7  ;;  %vm808_vm1 = vcmp.lt.s32.totalorder %v794_v29, 256 }
 0x2d0   : > { %v717_v40 = vmax.f32 %v702_v4, 0.0  ;;  %v747_v43 = vmul.f32 %v729_v38, %v715_v36 }
 0x2d1   : > { %v748_v42 = vmul.f32 %v734_v39, %v716_v37 }
 0x2d2   : > { %v749_v44 = vmul.f32 %v734_v39, %v717_v40  ;;  %v705_v45 = vpop.f32.mrb[8].mxu0 }
 0x2d3   : > { %v754_v46 = vadd.f32 %v748_v42, %v746_v41  ;;  %v706_v47 = vadd.f32 %v705_v45, %v638_v26  ;;  %v707_v48 = vpop.f32.mrb[9].mxu0 }
 0x2d4   : > { %v763_v49 = vadd.f32 %v749_v44, %v747_v43  ;;  %v708_v50 = vadd.f32 %v707_v48, %v638_v26  ;;  %v709_v51 = vpop.f32.mrb[10].mxu0 }
 0x2d5   : > { %v718_v52 = vmax.f32 %v706_v47, 0.0  ;;  %v710_v53 = vadd.f32 %v709_v51, %v643_v27  ;;  %v711_v54 = vpop.f32.mrb[11].mxu0 }
 0x2d6   : > { %v719_v56 = vmax.f32 %v708_v50, 0.0  ;;  %v712_v57 = vadd.f32 %v711_v54, %v643_v27  ;;  %v1057_v27 = vmov 1966171168  }
 0x2d7   : > { %v750_v58 = vmul.f32 %v739_v55, %v718_v52  ;;  %v720_v59 = vmax.f32 %v710_v53, 0.0  ;;  %v792_v28 = vunpack.c.l.s4 %v1057_v27 }
 0x2d8   : > { %v751_v61 = vmul.f32 %v739_v55, %v719_v56  ;;  %v721_v62 = vmax.f32 %v712_v57, 0.0 }
 0x2d9   : > { %v755_v63 = vadd.f32 %v754_v46, %v750_v58  ;;  %v752_v0 = vmul.f32 %v744_v60, %v720_v59  ;;  %v793_v30 = vunpack.c.0.s8 %v792_v28 }
 0x2da   : > { %v764_v1 = vadd.f32 %v763_v49, %v751_v61  ;;  %v753_v2 = vmul.f32 %v744_v60, %v721_v62 }
 0x2db   : > { %v756_v3 = vadd.f32 %v755_v63, %v752_v0  ;;  %v796_v33 = vsub.s32 %v793_v30, %v795_v31 }
 0x2dc   : > { %v765_v5 = vadd.f32 %v764_v1, %v753_v2 }
 0x2dd   : > { %v757_v6 = vrot.slane %v756_v3, 4 }
 0x2de   : > { %v766_v7 = vrot.slane %v765_v5, 4 }
 0x2df   : > { %v758_v8 = vadd.f32 %v757_v6, %v756_v3 }
 0x2e0   : > { %v767_v9 = vadd.f32 %v766_v7, %v765_v5 }
 0x2e1   : > { %v759_v10 = vrot.slane %v758_v8, 2 }
 0x2e2   : > { %v768_v11 = vrot.slane %v767_v9, 2 }
 0x2e3   : > { %v760_v12 = vadd.f32 %v759_v10, %v758_v8 }
 0x2e4   : > { %v769_v13 = vadd.f32 %v768_v11, %v767_v9 }
 0x2e5   : > { %v761_v14 = vrot.slane %v760_v12, 1 }
 0x2e6   : > { %v770_v16 = vrot.slane %v769_v13, 1 }
 0x2e7   : > { %v762_v17 = vadd.f32 %v761_v14, %v760_v12 }
 0x2e8   : > { %v771_v18 = vadd.f32 %v770_v16, %v769_v13 }
 0x2e9   : > { %v774_v19 = vadd.f32 %v773_v15, %v762_v17 }
 0x2ea   : > { %v775_v20 = vadd.f32 %v773_v15, %v771_v18 }
 0x2eb   : > { %v916_v21 = vmul.f32 -1.442695, %v774_v19 }
 0x2ec   : > { %v917_v22 = vmul.f32 -1.442695, %v775_v20 }
 0x2ed   : > { %984 = vpow2.f32 %v916_v21 }
 0x2ee   : > { %986 = vpow2.f32 %v917_v22 }
 0x2f7   : > { %v985_v23 = vpop.eup %984 }
 0x2f8   : > { %v987_v24 = vpop.eup %986  ;;  %v782_v25 = vadd.f32 1.0, %v985_v23 }
 0x2f9   : > { %v783_v26 = vadd.f32 1.0, %v987_v24 }
 0x2fa   : > { %988 = vrcp.f32 %v782_v25 }
 0x2fb   : > { %990 = vrcp.f32 %v783_v26 }
 0x304   : > { %v989_v32 = vpop.eup %988 }
 0x305   : > { %v991_v34 = vpop.eup %990 }
 0x306   : > { %v790_v35 = vcombine.low %v989_v32, %v991_v34 }
 0x308   : > { %v797_v36 = vrot.slane %v790_v35, %v796_v33 }
 0x30a   : > { %v804_v4 = vrot.slane %v797_v36, %v796_v33 }
 0x30c   : > { %810 = vst.msk [vmem:[%s378_s10] sm:$0x3] %vm808_vm1, %v804_v4 }
 0x30d   : > { %1005 = shalt.err (!%p1002_p5)
}
 0x30e   : > { %s1006_s29 = scalar_lea.hbm %s1258_s22, 32  ;;  %s1010_s30 = scalar_lea.hbm %s1311_s9, 64 }
 0x30f   : > { %p1007_p7 = scmp.ne.s32.totalorder %s1258_s22, %s1006_s29  ;;  %p1011_p12 = scmp.lt.u32.totalorder %s1258_s22, %s1311_s9 }
 0x310   : > { %p1012_p13 = scmp.lt.u32.totalorder %s1010_s30, %s1006_s29  ;;  %p1014_p1 = scmp.lt.u32.totalorder %s1006_s29, %s1258_s22 }
 0x311   : > { %p1008_p10 = pnand %p1007_p7, %p1150_p6 }
 0x312   : > { %p1013_p0 = por %p1012_p13, %p1011_p12 }
 0x313   : > { %p1009_p11 = pneg %p1008_p10 }
 0x314   : > { %p1015_p2 = por %p1014_p1, %p1013_p0 }
 0x316   : > { %p1016_p3 = pnand %p1015_p2, %p1009_p11 }
 0x318   : > { %1019 = shalt.err (!%p1016_p3)
}
 0x319   : > { %929 = dma.vmem_to_hbm [thread:$0]  (%p1150_p6), %s1260_s15, 32, %s1258_s22, %s812_s23  }
 0x31a PF: > { %s838_s18 = sand.u32 1, %s1042_s11   ;;  %p932_p4 = pnand %p893_p9, %p1154_p8 }
 0x31b   : > { %s839_s24 = scalar_lea.sflag [#allocation5], %s838_s18 }
 0x31c   : > { %1037 = dma.done.wait (!%p932_p4), %s839_s24, 32  }
 0x31d   : > { %1039 = vsyncadd (!%p932_p4), %s839_s24, 4294967264  ;;  %p20_p5 = scmp.ge.s32.totalorder %s1135_s16, 4   ;;  %s1314_s11 = smov %s1046_s12 }
 0x31e   : > { %s1315_s12 = smov %s1050_s13  ;;  %s1316_s13 = smov %s1148_s19 }
 0x31f   : > { %s1317_s14 = smov %s1135_s16  ;;  %22 = sbr.rel (!%p20_p5) target bundleno = 5 (0x5), region = 134 }
 0x326   :  { %844 = vsyncpa [#allocation5], 1 }
 0x327   :  { %846 = vsyncpa [#allocation5 + $0x1], 1 }

</bundles_post_ra>
